<compile_context>
chip_gen: v5e
topology: v5e:2x2
jax: 0.10.0
libtpu: 0.0.40
codegen_flags: <defaults>
</compile_context>

<pallas_src>
import jax
import jax.numpy as jnp
from jax import lax
from jax.experimental import pallas as pl
from jax.experimental.pallas import tpu as pltpu


def ca_block_kernel(gamma_ref, x_ref, w_ref, o_ref, e_ref):
    # gamma_ref: SMEM (1,) f32
    # x_ref:     (1, C+1, TN) f32   (row C is the valid-column mask)
    # w_ref:     (3C, C+1)   bf16   (rows [Wq; Wk; Wv], last column = bias)
    # o_ref:     (1, C, TN)
    # e_ref:     VMEM (C, C) f32 scratch (energy, then attention)
    p = pl.program_id(1)          # 0: energy accumulation + softmax, 1: output
    t = pl.program_id(2)          # spatial tile index
    nt = pl.num_programs(2)
    C = o_ref.shape[1]

    x = x_ref[0]                                  # (C+1, TN) f32
    xb = x.astype(jnp.bfloat16)                   # MXU operand

    @pl.when(p == 0)
    def _energy_pass():
        @pl.when(t == 0)
        def _init():
            e_ref[...] = jnp.zeros_like(e_ref)

        # Fused Q/K projection; the bias add rides along via the mask row of x,
        # so padded columns of q/k are exactly zero.
        qk = jnp.dot(w_ref[0:2 * C, :], xb,
                     preferred_element_type=jnp.float32)          # (2C, TN)
        q = qk[0:C].astype(jnp.bfloat16)
        k = qk[C:2 * C].astype(jnp.bfloat16)

        # energy += q @ k^T, contracting the N axis directly (no k.T copy).
        e_ref[...] += lax.dot_general(
            q, k, (((1,), (1,)), ((), ())),
            preferred_element_type=jnp.float32)

        @pl.when(t == nt - 1)
        def _softmax():
            e = e_ref[...]
            e = e - jnp.max(e, axis=-1, keepdims=True)
            pexp = jnp.exp(e)
            inv = pl.reciprocal(jnp.sum(pexp, axis=-1, keepdims=True),
                                approx=True)
            e_ref[...] = pexp * inv                # now holds attention (C, C)

    @pl.when(p == 1)
    def _output_pass():
        # V projection only (bias folded in, padded columns -> 0).
        v = jnp.dot(w_ref[2 * C:3 * C, :], xb,
                    preferred_element_type=jnp.float32)           # (C, TN)
        attn = e_ref[...].astype(jnp.bfloat16)                    # (C, C)
        out = jnp.dot(attn, v.astype(jnp.bfloat16),
                      preferred_element_type=jnp.float32)         # (C, TN)
        o_ref[0] = (gamma_ref[0] * out + x[0:C]).astype(o_ref.dtype)


def _choose_tile_n(n_pad, c, vmem_budget_bytes=12 * 1024 * 1024):
    """Largest 128-multiple tile that divides n_pad and fits the VMEM budget.

    Rough per-lane footprint: double-buffered x & out blocks plus the live
    f32/bf16 intermediates (qk, q, k, v, bf16 x) ~= 4 * (8*c + 2) bytes/lane.
    Capped at 2048 lanes (diminishing roofline returns beyond ~1-2K lanes).
    """
    per_lane = 4 * (8 * c + 2)
    cap = max(128, min(2048, (vmem_budget_bytes // per_lane) // 128 * 128))
    tn = min(n_pad, cap)
    while n_pad % tn:
        tn -= 128
    return tn


def ca_block(x, wq, bq, wk, bk, wv, bv, gamma):
    """x: (B, C, H, W) float32.  Returns (B, C, H, W)."""
    B, C, H, W = x.shape
    N = H * W
    n_pad = ((N + 127) // 128) * 128
    caug = C + 1

    xf = x.reshape(B, C, N).astype(jnp.float32)
    # Augmented input: extra channel row = 1 on valid columns, 0 on pad columns
    # (carries the bias and masks the padding in one shot).
    x_aug = jnp.zeros((B, caug, n_pad), jnp.float32)
    x_aug = x_aug.at[:, :C, :N].set(xf)
    x_aug = x_aug.at[:, C, :N].set(1.0)

    # Fused [Wq; Wk; Wv] with the biases folded in as an extra input channel.
    w = jnp.concatenate([wq, wk, wv], axis=0)                     # (3C, C)
    b = jnp.concatenate([bq, bk, bv], axis=0).reshape(3 * C, 1)   # (3C, 1)
    wqkvb = jnp.concatenate([w, b], axis=1).astype(jnp.bfloat16)  # (3C, C+1)

    tn = _choose_tile_n(n_pad, C)
    nt = n_pad // tn
    gamma1 = gamma.reshape(1).astype(jnp.float32)

    out = pl.pallas_call(
        ca_block_kernel,
        out_shape=jax.ShapeDtypeStruct((B, C, n_pad), x.dtype),
        grid=(B, 2, nt),
        in_specs=[
            pl.BlockSpec(memory_space=pltpu.MemorySpace.SMEM),            # gamma
            pl.BlockSpec((1, caug, tn), lambda b, p, t: (b, 0, t)),       # x_aug
            pl.BlockSpec((3 * C, caug), lambda b, p, t: (0, 0)),          # wqkvb
        ],
        # During the energy pass (p==0) the output block index is pinned to
        # tile 0 so no garbage block is ever written back; real tiles are
        # produced (and written back) only during p==1.
        out_specs=pl.BlockSpec((1, C, tn), lambda b, p, t: (b, 0, t * p)),
        scratch_shapes=[pltpu.VMEM((C, C), jnp.float32)],
        compiler_params=pltpu.CompilerParams(
            dimension_semantics=("parallel", "arbitrary", "arbitrary"),
            vmem_limit_bytes=32 * 1024 * 1024),
    )(gamma1, x_aug, wqkvb)

    return out[:, :, :N].reshape(B, C, H, W)


def ca_block_ref(x, wq, bq, wk, bk, wv, bv, gamma):
    """Pure-JAX f32 reference matching the PyTorch forward."""
    B, C, H, W = x.shape
    N = H * W
    xf = x.reshape(B, C, N)
    q = jnp.einsum('oc,bcn->bon', wq, xf) + bq.reshape(1, C, 1)
    k = jnp.einsum('oc,bcn->bon', wk, xf) + bk.reshape(1, C, 1)
    v = jnp.einsum('oc,bcn->bon', wv, xf) + bv.reshape(1, C, 1)
    energy = jnp.einsum('bcn,bdn->bcd', q, k)           # (B, C, C)
    attn = jax.nn.softmax(energy, axis=-1)
    out = jnp.einsum('bcd,bdn->bcn', attn, v)
    return gamma.reshape(()) * out.reshape(B, C, H, W) + x


if __name__ == "__main__":
    key = jax.random.PRNGKey(0)
    B, C, H, W = 2, 8, 14, 14          # N = 196 -> exercises the pad-to-128 path

    ks = jax.random.split(key, 8)
    x = jax.random.normal(ks[0], (B, C, H, W), dtype=jnp.float32)
    scale = 1.0 / C                    # keep energies tame (bf16 MXU operands)
    wq = jax.random.normal(ks[1], (C, C), dtype=jnp.float32) * scale
    bq = jax.random.normal(ks[2], (C,), dtype=jnp.float32) * 0.1
    wk = jax.random.normal(ks[3], (C, C), dtype=jnp.float32) * scale
    bk = jax.random.normal(ks[4], (C,), dtype=jnp.float32) * 0.1
    wv = jax.random.normal(ks[5], (C, C), dtype=jnp.float32) * scale
    bv = jax.random.normal(ks[6], (C,), dtype=jnp.float32) * 0.1
    gamma = jnp.ones((1,), dtype=jnp.float32)   # nn.Parameter(torch.ones(1))

    out = jax.block_until_ready(ca_block(x, wq, bq, wk, bk, wv, bv, gamma))
    ref = ca_block_ref(x, wq, bq, wk, bk, wv, bv, gamma)

    assert out.shape == (B, C, H, W)
    # Tolerance accounts for bf16 MXU operands (f32 accumulation).
    assert jnp.allclose(out, ref, atol=3e-2, rtol=3e-2), "mismatch vs reference"

    print("KERNEL_OK")
</pallas_src>

<mosaic_0001>
module attributes {stable_mosaic.version = 11 : i64} {
  func.func @ca_block_kernel(%arg0: i32, %arg1: i32, %arg2: i32, %arg3: memref<1xf32, #tpu.memory_space<smem>>, %arg4: memref<1x9x256xf32, #tpu.memory_space<vmem>>, %arg5: memref<24x9xbf16, #tpu.memory_space<vmem>>, %arg6: memref<1x8x256xf32, #tpu.memory_space<vmem>>, %arg7: memref<8x8xf32, #tpu.memory_space<vmem>>) attributes {dimension_semantics = [#tpu.dimension_semantics<parallel>, #tpu.dimension_semantics<arbitrary>, #tpu.dimension_semantics<arbitrary>], iteration_bounds = array<i64: 2, 2, 1>, scalar_prefetch = 0 : i64, scratch_operands = 1 : i64, tpu.core_type = #tpu.core_type<tc>, window_params = [{transform_indices = @transform_0, window_bounds = array<i64: 1>}, {transform_indices = @transform_1, window_bounds = array<i64: 1, 9, 256>}, {pipeline_mode = #tpu.pipeline_mode<synchronous>, transform_indices = @transform_2, window_bounds = array<i64: 24, 9>}, {transform_indices = @transform_3, window_bounds = array<i64: 1, 8, 256>}]} {
    %c0 = arith.constant 0 : index
    %c0_0 = arith.constant 0 : index
    %c0_1 = arith.constant 0 : index
    %0 = vector.load %arg4[%c0, %c0_0, %c0_1] : memref<1x9x256xf32, #tpu.memory_space<vmem>>, vector<1x9x256xf32>
    %1 = vector.shape_cast %0 : vector<1x9x256xf32> to vector<9x256xf32>
    %2 = arith.truncf %1 : vector<9x256xf32> to vector<9x256xbf16>
    %c0_i32 = arith.constant 0 : i32
    %3 = arith.cmpi eq, %arg1, %c0_i32 : i32
    %4 = arith.extui %3 : i1 to i32
    %c0_i32_2 = arith.constant 0 : i32
    %5 = arith.cmpi ne, %4, %c0_i32_2 : i32
    scf.if %5 {
      %c0_i32_4 = arith.constant 0 : i32
      %9 = arith.cmpi eq, %arg2, %c0_i32_4 : i32
      %10 = arith.extui %9 : i1 to i32
      %c0_i32_5 = arith.constant 0 : i32
      %11 = arith.cmpi ne, %10, %c0_i32_5 : i32
      scf.if %11 {
        %cst_15 = arith.constant 0.000000e+00 : f32
        %25 = vector.broadcast %cst_15 : f32 to vector<8x8xf32>
        %c0_16 = arith.constant 0 : index
        %c0_17 = arith.constant 0 : index
        %26 = vector.load %arg7[%c0_16, %c0_17] : memref<8x8xf32, #tpu.memory_space<vmem>>, vector<8x8xf32>
        tpu.vector_store %arg7[%c0_16, %c0_17], %25 {strides = array<i32>} : memref<8x8xf32, #tpu.memory_space<vmem>>, vector<8x8xf32>,
      } else {
      }
      %c0_6 = arith.constant 0 : index
      %c0_7 = arith.constant 0 : index
      %12 = vector.load %arg5[%c0_6, %c0_7] : memref<24x9xbf16, #tpu.memory_space<vmem>>, vector<16x9xbf16>
      %cst = arith.constant dense<0.000000e+00> : vector<16x256xf32>
      %13 = tpu.matmul %12, %2, %cst {dimension_numbers = #tpu.dot_dimension_numbers<[1], [0], [0], [1], [0, 0, 1, 1], [], []>} : vector<16x9xbf16>, vector<9x256xbf16>, vector<16x256xf32> -> vector<16x256xf32>
      %14 = vector.extract_strided_slice %13 {offsets = [0, 0], sizes = [8, 256], strides = [1, 1]} : vector<16x256xf32> to vector<8x256xf32>
      %15 = arith.truncf %14 : vector<8x256xf32> to vector<8x256xbf16>
      %16 = vector.extract_strided_slice %13 {offsets = [8, 0], sizes = [8, 256], strides = [1, 1]} : vector<16x256xf32> to vector<8x256xf32>
      %17 = arith.truncf %16 : vector<8x256xf32> to vector<8x256xbf16>
      %c0_8 = arith.constant 0 : index
      %c0_9 = arith.constant 0 : index
      %18 = vector.load %arg7[%c0_8, %c0_9] : memref<8x8xf32, #tpu.memory_space<vmem>>, vector<8x8xf32>
      %cst_10 = arith.constant dense<0.000000e+00> : vector<8x8xf32>
      %19 = tpu.matmul %15, %17, %cst_10 {dimension_numbers = #tpu.dot_dimension_numbers<[1], [1], [0], [0], [0, 0, 1, 0], [], []>} : vector<8x256xbf16>, vector<8x256xbf16>, vector<8x8xf32> -> vector<8x8xf32>
      %20 = arith.addf %18, %19 : vector<8x8xf32>
      %c0_11 = arith.constant 0 : index
      %c0_12 = arith.constant 0 : index
      %21 = vector.load %arg7[%c0_11, %c0_12] : memref<8x8xf32, #tpu.memory_space<vmem>>, vector<8x8xf32>
      tpu.vector_store %arg7[%c0_11, %c0_12], %20 {strides = array<i32>} : memref<8x8xf32, #tpu.memory_space<vmem>>, vector<8x8xf32>,
      %c0_i32_13 = arith.constant 0 : i32
      %22 = arith.cmpi eq, %arg2, %c0_i32_13 : i32
      %23 = arith.extui %22 : i1 to i32
      %c0_i32_14 = arith.constant 0 : i32
      %24 = arith.cmpi ne, %23, %c0_i32_14 : i32
      scf.if %24 {
        %c0_15 = arith.constant 0 : index
        %c0_16 = arith.constant 0 : index
        %25 = vector.load %arg7[%c0_15, %c0_16] : memref<8x8xf32, #tpu.memory_space<vmem>>, vector<8x8xf32>
        %cst_17 = arith.constant dense<0xFF800000> : vector<8xf32>
        %26 = vector.multi_reduction <maximumf>, %25, %cst_17 [1] : vector<8x8xf32> to vector<8xf32>
        %27 = vector.shape_cast %26 : vector<8xf32> to vector<8x1xf32>
        %28 = vector.broadcast %27 : vector<8x1xf32> to vector<8x8xf32>
        %29 = arith.subf %25, %28 : vector<8x8xf32>
        %30 = math.exp %29 : vector<8x8xf32>
        %cst_18 = arith.constant dense<0.000000e+00> : vector<8xf32>
        %31 = vector.multi_reduction <add>, %30, %cst_18 [1] : vector<8x8xf32> to vector<8xf32>
        %32 = vector.shape_cast %31 : vector<8xf32> to vector<8x1xf32>
        %33 = tpu.reciprocal %32 {approx = true} : vector<8x1xf32> -> vector<8x1xf32>
        %34 = vector.broadcast %33 : vector<8x1xf32> to vector<8x8xf32>
        %35 = arith.mulf %30, %34 : vector<8x8xf32>
        %c0_19 = arith.constant 0 : index
        %c0_20 = arith.constant 0 : index
        %36 = vector.load %arg7[%c0_19, %c0_20] : memref<8x8xf32, #tpu.memory_space<vmem>>, vector<8x8xf32>
        tpu.vector_store %arg7[%c0_19, %c0_20], %35 {strides = array<i32>} : memref<8x8xf32, #tpu.memory_space<vmem>>, vector<8x8xf32>,
      } else {
      }
    } else {
    }
    %c1_i32 = arith.constant 1 : i32
    %6 = arith.cmpi eq, %arg1, %c1_i32 : i32
    %7 = arith.extui %6 : i1 to i32
    %c0_i32_3 = arith.constant 0 : i32
    %8 = arith.cmpi ne, %7, %c0_i32_3 : i32
    scf.if %8 {
      %c16 = arith.constant 16 : index
      %c0_4 = arith.constant 0 : index
      %9 = vector.load %arg5[%c16, %c0_4] : memref<24x9xbf16, #tpu.memory_space<vmem>>, vector<8x9xbf16>
      %cst = arith.constant dense<0.000000e+00> : vector<8x256xf32>
      %10 = tpu.matmul %9, %2, %cst {dimension_numbers = #tpu.dot_dimension_numbers<[1], [0], [0], [1], [0, 0, 1, 1], [], []>} : vector<8x9xbf16>, vector<9x256xbf16>, vector<8x256xf32> -> vector<8x256xf32>
      %c0_5 = arith.constant 0 : index
      %c0_6 = arith.constant 0 : index
      %11 = vector.load %arg7[%c0_5, %c0_6] : memref<8x8xf32, #tpu.memory_space<vmem>>, vector<8x8xf32>
      %12 = arith.truncf %11 : vector<8x8xf32> to vector<8x8xbf16>
      %13 = arith.truncf %10 : vector<8x256xf32> to vector<8x256xbf16>
      %cst_7 = arith.constant dense<0.000000e+00> : vector<8x256xf32>
      %14 = tpu.matmul %12, %13, %cst_7 {dimension_numbers = #tpu.dot_dimension_numbers<[1], [0], [0], [1], [0, 0, 1, 1], [], []>} : vector<8x8xbf16>, vector<8x256xbf16>, vector<8x256xf32> -> vector<8x256xf32>
      %c0_8 = arith.constant 0 : index
      %15 = memref.load %arg3[%c0_8] : memref<1xf32, #tpu.memory_space<smem>>
      %16 = vector.broadcast %15 : f32 to vector<8x256xf32>
      %17 = arith.mulf %16, %14 : vector<8x256xf32>
      %18 = vector.extract_strided_slice %1 {offsets = [0, 0], sizes = [8, 256], strides = [1, 1]} : vector<9x256xf32> to vector<8x256xf32>
      %19 = arith.addf %17, %18 : vector<8x256xf32>
      %c0_9 = arith.constant 0 : index
      %c0_10 = arith.constant 0 : index
      %c0_11 = arith.constant 0 : index
      %20 = vector.load %arg6[%c0_9, %c0_10, %c0_11] : memref<1x8x256xf32, #tpu.memory_space<vmem>>, vector<1x8x256xf32>
      %21 = vector.shape_cast %20 : vector<1x8x256xf32> to vector<8x256xf32>
      %22 = vector.shape_cast %19 : vector<8x256xf32> to vector<1x8x256xf32>
      tpu.vector_store %arg6[%c0_9, %c0_10, %c0_11], %22 {strides = array<i32>} : memref<1x8x256xf32, #tpu.memory_space<vmem>>, vector<1x8x256xf32>,
    } else {
    }
    return
  }
  func.func @transform_0(%arg0: i32, %arg1: i32, %arg2: i32) -> i32 {
    %c0_i32 = arith.constant 0 : i32
    %c0_i32_0 = arith.constant 0 : i32
    return %c0_i32 : i32
  }
  func.func @transform_1(%arg0: i32, %arg1: i32, %arg2: i32) -> (i32, i32, i32) {
    %c0_i32 = arith.constant 0 : i32
    %c0_i32_0 = arith.constant 0 : i32
    return %arg0, %c0_i32, %arg2 : i32, i32, i32
  }
  func.func @transform_2(%arg0: i32, %arg1: i32, %arg2: i32) -> (i32, i32) {
    %c0_i32 = arith.constant 0 : i32
    %c0_i32_0 = arith.constant 0 : i32
    %c0_i32_1 = arith.constant 0 : i32
    return %c0_i32, %c0_i32_0 : i32, i32
  }
  func.func @transform_3(%arg0: i32, %arg1: i32, %arg2: i32) -> (i32, i32, i32) {
    %0 = arith.muli %arg2, %arg1 : i32
    %c0_i32 = arith.constant 0 : i32
    %c0_i32_0 = arith.constant 0 : i32
    return %arg0, %c0_i32, %0 : i32, i32, i32
  }
}

</mosaic_0001>

<bundles_post_ra>
// kernel: tpu_custom_call.1
= control target key start
LH: loop header
LB: loop body
LE: loop exit
PB: predicated region body
PF: predicated region fallthrough
CT: control target
= control target key end

     0   :  { %s908_s0 = inlined_call_operand.<no memory space> [shape: f32[1], index: 0, kind: input, shape index: {}]   ;;  %s909_s1 = inlined_call_operand.vmem [shape: f32[2,9,256], index: 1, kind: input, shape index: {}]   ;;  %s910_s2 = inlined_call_operand.vmem [shape: bf16[24,9], index: 2, kind: input, shape index: {}]   ;;  %s911_s3 = inlined_call_operand.hbm [shape: f32[2,8,256], index: 3, kind: output, shape index: {}]  }
   0x1   :  { %8 = sst [smem:[#allocation3]] %s908_s0 }
   0x2   :  { %9 = vsyncpa [#allocation5], 0 }
   0x3   :  { %11 = vsyncpa [#allocation5 + $0x1], 0  ;;  %s750_s14 = smov 0   ;;  %s752_s15 = smov 0  }
   0x4   :  { %s754_s16 = smov 0   ;;  %s756_s17 = smov 0  }
   0x5   :  { %s758_s18 = smov 0   ;;  %s760_s19 = smov 0  }
   0x6   :  { %s762_s20 = smov 0   ;;  %s764_s21 = smov 0  }
   0x7 LB: > { %s522_s0 = sadd.s32 4294967295, %s722_s21   ;;  %s523_s22 = sadd.s32 4294967294, %s722_s21   ;;  %s722_s21 = sphi %s764_s21, %s17_s21   ;;  %s718_s20 = sphi %s762_s20, %s920_s20   ;;  %s714_s19 = sphi %s760_s19, %s919_s19   ;;  %s710_s18 = sphi %s758_s18, %s918_s18   ;;  %s706_s17 = sphi %s756_s17, %s917_s17   ;;  %s702_s16 = sphi %s754_s16, %s916_s16   ;;  %s698_s15 = sphi %s752_s15, %s915_s15   ;;  %s694_s14 = sphi %s750_s14, %s914_s14  }
   0x8   : > { %s32_s23 = sadd.s32 1, %s714_s19  ;;  %s36_s24 = sadd.s32 1, %s718_s20 }
   0x9   : > { %p34_p0 = scmp.ge.s32.totalorder %s32_s23, 2  ;;  %p127_p1 = scmp.ne.s32.totalorder %s702_s16, %s698_s15 }
   0xa   : > { %p128_p2 = scmp.eq.s32.totalorder %s522_s0, 3  ;;  %p133_p4 = scmp.ne.s32.totalorder %s698_s15, %s694_s14 }
   0xb   : > { %s922_s23 = smov (%p34_p0, %s32_s23), 0  ;;  %s924_s24 = smov (!%p34_p0, %s36_s24), %s718_s20 }
   0xc   : > { %p799_p3 = por %p128_p2, %p127_p1  ;;  %p38_p5 = scmp.ge.s32.totalorder %s924_s24, 2 }
   0xd   : > { %p134_p6 = scmp.eq.s32.totalorder %s523_s22, 3  ;;  %p526_p7 = scmp.ge.s32.totalorder %s722_s21, 1 }
   0xe   : > { %p171_p8 = scmp.lt.s32.totalorder %s722_s21, 5  ;;  %s926_s24 = smov (%p38_p5, %s924_s24), 0 }
   0xf   : > { %p809_p9 = por %p134_p6, %p133_p4  ;;  %s112_s27 = ssub.s32 %s718_s20, %s926_s24 }
  0x10   : > { %p172_p10 = pnand %p526_p7, %p171_p8  ;;  %s117_s28 = sadd.s32 1, %s702_s16 }
  0x11   : > { %p115_p11 = scmp.eq.s32.totalorder %s112_s27, 0  ;;  %s196_s30 = sand.u32 (!%p172_p10), 1, %s698_s15  }
  0x12   : > { %175 = sbr.rel (%p172_p10) target bundleno = 882 (0x372), region = 32  ;;  %p200_p12 = scmp.lt.s32.totalorder (!%p172_p10), %s710_s18, 1 }
  0x13   : > { %s817_s29 = scalar_select %p115_p11, %s702_s16, %s117_s28  }
  0x14   : > { %s527_s4 = sshll.u32 (!%p172_p10), %s196_s30, 4  ;;  %p530_p13 = scmp.ne.s32.totalorder (!%p172_p10), %s706_s17, 0 }
  0x15   : > { %s837_s10 = scalar_lea.vmem (!%p172_p10), [#allocation4], %s527_s4 }
  0x17   : > { %s201_s5 = scalar_select %p200_p12, %s710_s18, 1 }
  0x19   : > { %s547_s6 = sshll.u32 %s201_s5, 5  ;;  %221 = sbr.rel (%p530_p13) target bundleno = 580 (0x244), region = 36 }
  0x1a   : > { %s207_s9 = scalar_lea.vmem %s909_s1, %s547_s6 }
  0x1b   : > { %v827_v0 = vld [vmem:[%s207_s9] sm:$0xff]  ;;  %v829_v1 = vld [vmem:[%s207_s9 + $0x8] sm:$0xff]  ;;  %v214_v2 = vld [vmem:[%s207_s9 + $0x10] sm:$0x1] }
  0x1c   : > { %v215_v3 = vld [vmem:[%s207_s9 + $0x18] sm:$0x1]  ;;  %v832_v4 = vpack.c.bf16 %v214_v2, %v827_v0 }
  0x1d   : > { %v835_v5 = vpack.c.bf16 %v215_v3, %v829_v1 }
  0x1e   : > { %vm239_vm0 = vcmask 1043456   ;;  %vm240_vm1 = vcmask 1044480   ;;  %v724_v6 = vmov 65535   ;;  %v548_v11 = vld [vmem:[%s910_s2] sm:$0xff]  ;;  %vm235_vm2 = vcmask 72704  }
  0x1f   : > { %v241_v7 = vsel %vm239_vm0, 4294967295, %v724_v6  ;;  %vm226_vm3 = vcmask 64512   ;;  %v725_v20 = vmov 0.0  }
  0x20   : > { %v242_v8 = vsel %vm240_vm1, %v241_v7, 0  ;;  %227 = vst.msk [vmem:[#allocation2] sm:$0xff] %vm226_vm3, %v725_v20 }
  0x21   : > { %v244_v9 = vand.u32 %v242_v8, %v832_v4  ;;  %v247_v10 = vand.u32 %v242_v8, %v835_v5 }
  0x23   : > { %256 = vmatpush.bf16.msra.mxu0 %v244_v9  ;;  %270 = vmatpush.bf16.msra.mxu1 %v247_v10 }
  0x26   : > { %535 = vmatmul.msk.bf16.vlgmr.msra.gmra.mxu0 %vm235_vm2, %v548_v11  ;;  %536 = vmatmul.msk.bf16.vlgmr.msra.gmra.mxu1 %vm235_vm2, %v548_v11 }
  0x27   : > { %v281_v22 = vld [vmem:[#allocation2] sm:$0xff] }
  0xa3   : > { %v258_v12 = vpop.f32.mrf.mxu0  ;;  %v272_v13 = vpop.f32.mrf.mxu1 }
  0xa4   : > { %v277_v18 = vpack.c.bf16 %v258_v12, %v258_v12  ;;  %v278_v19 = vpack.c.bf16 %v272_v13, %v272_v13 }
  0xab   : > { %v260_v14 = vpop.f32.mrf.mxu0  ;;  %v274_v15 = vpop.f32.mrf.mxu1 }
  0xac   : > { %v279_v16 = vpack.c.bf16 %v260_v14, %v260_v14  ;;  %v280_v17 = vpack.c.bf16 %v274_v15, %v274_v15 }
  0xae   : > { %289 = vmatpush.bf16.xpose.msra.mxu2 %v279_v16  ;;  %302 = vmatpush.bf16.xpose.msra.mxu3 %v280_v17 }
  0xb5   : > { %290 = vmatmul.bf16.vlgmr.msra.gmra.mxu2 %v277_v18  ;;  %303 = vmatmul.bf16.vlgmr.msra.gmra.mxu3 %v278_v19 }
 0x138   : > { %v291_v21 = vpop.f32.mrf.mxu2  ;;  %v304_v23 = vpop.f32.mrf.mxu3 }
 0x139   : > { %v305_v24 = vadd.f32 %v304_v23, %v291_v21 }
 0x13b   : > { %v308_v25 = vadd.f32 %v305_v24, %v281_v22 }
 0x13d   : > { %310 = vst.msk [vmem:[#allocation2] sm:$0xff] %vm226_vm3, %v308_v25 }
 0x140   : > { %v293_v26 = vpop.f32.mrf.mxu2  ;;  %v306_v27 = vpop.f32.mrf.mxu3 }
 0x144   : > { %v314_v28 = vld [vmem:[#allocation2] sm:$0xff] }
 0x145   : > { %v315_v29 = vsel %vm226_vm3, %v314_v28, -inf }
 0x146   : > { %316 = vmax.xlane.f32.xlu0 %v315_v29 }
 0x1b9   : > { %v317_v30 = vpop.xlane.xlu0 %316 }
 0x1ba   : > { %v318_v31 = vsub.f32 %v314_v28, %v317_v30 }
 0x1bc   : > { %v319_v32 = vmul.f32 1.442695, %v318_v31 }
 0x1be   : > { %624 = vpow2.f32 %v319_v32 }
 0x1c4   : > { %v625_v33 = vpop.eup %624 }
 0x1c5   : > { %v321_v34 = vsel %vm226_vm3, %v625_v33, 0.0 }
 0x1c6   : > { %322 = vadd.xlane.f32.xlu0 %v321_v34 }
 0x239   : > { %v323_v35 = vpop.xlane.xlu0 %322 }
 0x23a   : > { %626 = vrcp.f32 %v323_v35 }
 0x240   : > { %v627_v36 = vpop.eup %626 }
 0x241   : > { %v325_v37 = vmul.f32 %v627_v36, %v625_v33 }
 0x243   : > { %326 = vst.msk [vmem:[#allocation2] sm:$0xff] %vm226_vm3, %v325_v37 }
 0x244 PF: > { %p537_p0 = scmp.ne.s32.totalorder %s706_s17, 1 }
 0x245   : > { %s412_s17 = sld [smem:[#allocation3]] (!%p537_p0) }
 0x246   : > { %330 = sbr.rel (%p537_p0) target bundleno = 867 (0x363), region = 48 }
 0x24b   : > { %vm336_vm4 = vcmask 1043456   ;;  %vm337_vm5 = vcmask 1044480   ;;  %v726_v38 = vmov 65535   ;;  %v331_v43 = vld [vmem:[%s910_s2 + $0x8] sm:$0xf]  ;;  %vm332_vm6 = vcmask 72704  }
 0x24c   : > { %v338_v39 = vsel %vm336_vm4, 4294967295, %v726_v38  ;;  %v372_v46 = vld [vmem:[#allocation2] sm:$0xff]  ;;  %vm376_vm7 = vcmask 64512   ;;  %v413_v54 = vstv %s412_s17 }
 0x24d   : > { %v339_v40 = vsel %vm337_vm5, %v338_v39, 0  ;;  %v373_v51 = vpack.c.bf16 %v372_v46, %v372_v46 }
 0x24e   : > { %v341_v41 = vand.u32 %v339_v40, %v832_v4  ;;  %v344_v42 = vand.u32 %v339_v40, %v835_v5 }
 0x250   : > { %353 = vmatpush.bf16.msra.mxu0 %v341_v41  ;;  %366 = vmatpush.bf16.msra.mxu1 %v344_v42 }
 0x253   : > { %538 = vmatmul.msk.bf16.vlgmr.msra.gmra.mxu0 %vm332_vm6, %v331_v43  ;;  %539 = vmatmul.msk.bf16.vlgmr.msra.gmra.mxu1 %vm332_vm6, %v331_v43 }
 0x2d0   : > { %v355_v44 = vpop.f32.mrf.mxu0  ;;  %v368_v45 = vpop.f32.mrf.mxu1 }
 0x2d1   : > { %v374_v47 = vpack.c.bf16 %v355_v44, %v355_v44  ;;  %v375_v48 = vpack.c.bf16 %v368_v45, %v368_v45 }
 0x2d3   : > { %v381_v49 = vsel %vm336_vm4, %v374_v47, 0  ;;  %v384_v50 = vsel %vm336_vm4, %v375_v48, 0 }
 0x2d4   : > { %393 = vmatpush.bf16.msra.mxu2 %v381_v49  ;;  %406 = vmatpush.bf16.msra.mxu3 %v384_v50 }
 0x2d7   : > { %540 = vmatmul.msk.bf16.vlgmr.msra.gmra.mxu2 %vm376_vm7, %v373_v51  ;;  %541 = vmatmul.msk.bf16.vlgmr.msra.gmra.mxu3 %vm376_vm7, %v373_v51 }
 0x2d8   : > { %v357_v52 = vpop.f32.mrf.mxu0  ;;  %v370_v53 = vpop.f32.mrf.mxu1 }
 0x35a   : > { %v395_v55 = vpop.f32.mrf.mxu2  ;;  %v408_v56 = vpop.f32.mrf.mxu3 }
 0x35b   : > { %v414_v57 = vmul.f32 %v413_v54, %v395_v55  ;;  %v415_v58 = vmul.f32 %v413_v54, %v408_v56 }
 0x35d   : > { %v416_v59 = vadd.f32 %v414_v57, %v827_v0  ;;  %v417_v60 = vadd.f32 %v415_v58, %v829_v1 }
 0x35f   : > { %418 = vst [vmem:[%s837_s10] sm:$0xff] %v416_v59 }
 0x360   : > { %419 = vst [vmem:[%s837_s10 + $0x8] sm:$0xff] %v417_v60 }
 0x362   : > { %v397_v61 = vpop.f32.mrf.mxu2  ;;  %v410_v62 = vpop.f32.mrf.mxu3 }
 0x363 PF: > { %s549_s22 = sshll.u32 %s710_s18, 4  ;;  %s437_s5 = sshll.u32 %s837_s10, 4  ;;  %s438_s5 = int_to_ptr.vmem [resolvable:$true] %s437_s5 }
 0x364   : > { %s435_s4 = scalar_lea.hbm %s911_s3, %s549_s22  ;;  %s421_s7 = scalar_lea.sflag [#allocation5], %s196_s30 }
 0x365   : > { %s439_s6 = sshll.u32 %s435_s4, 4  ;;  %s648_s18 = scalar_lea.hbm %s911_s3, 32  ;;  %s440_s6 = int_to_ptr.hbm [resolvable:$true] %s439_s6 }
 0x366   : > { %s642_s8 = sshra.s32 %s440_s6, 4  ;;  %s643_s8 = int_to_ptr.hbm [resolvable:$true] %s642_s8 }
 0x367   : > { %s644_s9 = scalar_lea.hbm %s643_s8, 16  ;;  %p649_p5 = scmp.lt.s32.totalorder %s643_s8, %s911_s3 }
 0x368   : > { %p645_p1 = scmp.ne.s32.totalorder %s643_s8, %s644_s9  ;;  %p650_p6 = scmp.lt.s32.totalorder %s648_s18, %s644_s9 }
 0x36a   : > { %p646_p2 = pnand %p645_p1, %p799_p3  ;;  %p651_p7 = por %p650_p6, %p649_p5 }
 0x36c   : > { %p647_p4 = pneg %p646_p2 }
 0x36e   : > { %p652_p8 = pnand %p651_p7, %p647_p4 }
 0x370   : > { %655 = shalt.err (!%p652_p8)
}
 0x371   : > { %550 = dma.vmem_to_hbm [thread:$0]  (%p799_p3), %s438_s5, 256, %s440_s6, %s421_s7  }
 0x372 PF: > { %p556_p10 = scmp.ge.s32.totalorder %s722_s21, 2  ;;  %s451_s30 = sand.u32 1, %s694_s14  }
 0x373   : > { %s452_s10 = scalar_lea.sflag [#allocation5], %s451_s30 }
 0x374   : > { %p553_p11 = pnand %p556_p10, %p809_p9 }
 0x376   : > { %p554_p12 = pneg %p553_p11 }
 0x378   : > { %689 = dma.done.wait (%p554_p12), %s452_s10, 256  }
 0x379   : > { %691 = vsyncadd (%p554_p12), %s452_s10, 4294967040  ;;  %s17_s21 = sadd.s32 1, %s722_s21   ;;  %s914_s14 = smov %s698_s15 }
 0x37a   : > { %p14_p13 = scmp.ge.s32.totalorder %s17_s21, 6   ;;  %s915_s15 = smov %s702_s16 }
 0x37b   : > { %s916_s16 = smov %s817_s29  ;;  %s917_s17 = smov %s714_s19 }
 0x37c   : > { %s918_s18 = smov %s718_s20  ;;  %s919_s19 = smov %s922_s23 }
 0x37d   : > { %s920_s20 = smov %s926_s24  ;;  %16 = sbr.rel (!%p14_p13) target bundleno = 7 (0x7), region = 83 }
 0x382   :  { %458 = vsyncpa [#allocation5], 1 }
 0x383   :  { %460 = vsyncpa [#allocation5 + $0x1], 1 }

</bundles_post_ra>
